<compile_context>
chip_gen: v7x
topology: tpu7x:2x2x1
jax: 0.10.0
libtpu: 0.0.40
codegen_flags: <defaults>
</compile_context>

<pallas_src>
import functools

import numpy as np
import jax
import jax.numpy as jnp
from jax import lax
from jax.experimental import pallas as pl
from jax.experimental.pallas import tpu as pltpu


def _round_up(x, m):
    return ((x + m - 1) // m) * m


# ---------------------------------------------------------------------------
# Pallas kernel 1: tiled, fused  out = act(x @ w + b)
#   grid over M; weights / bias resident (index_map -> block 0).
# ---------------------------------------------------------------------------
def _matmul_bias_act_kernel(x_ref, w_ref, b_ref, o_ref, *, act):
    acc = jnp.dot(x_ref[...], w_ref[...], preferred_element_type=jnp.float32)
    acc = acc + b_ref[...]
    if act == "leaky_relu":
        acc = jnp.where(acc >= 0, acc, 0.2 * acc)   # negative_slope = 0.2
    elif act == "sigmoid":
        acc = jax.nn.sigmoid(acc)
    o_ref[...] = acc.astype(o_ref.dtype)


def matmul_bias_act(x, w, b, act, *, out_dtype=jnp.bfloat16, tm=512):
    """x: (M, K), w: (K, N), b: (N,) -> (M, N).

    bf16 operands, f32 accumulation.  Tiled over M (TM in the 512-row range,
    safe for v7x's 64 MiB VMEM; v6e can raise `tm`).  K and N are expected to
    be multiples of 128 (callers pad), M is padded here to a multiple of TM.
    """
    M, K = x.shape
    K2, N = w.shape
    assert K == K2
    TM = min(tm, _round_up(M, 16))          # 16: bf16 sublane packing
    Mp = _round_up(M, TM)

    xb = x.astype(jnp.bfloat16)
    if Mp != M:
        xb = jnp.pad(xb, ((0, Mp - M), (0, 0)))
    wb = w.astype(jnp.bfloat16)
    b2 = b.reshape(1, N).astype(jnp.float32)

    out_bytes = jnp.dtype(out_dtype).itemsize
    cost = pl.CostEstimate(
        flops=2 * Mp * K * N,
        transcendentals=Mp * N if act == "sigmoid" else 0,
        bytes_accessed=Mp * K * 2 + K * N * 2 + N * 4 + Mp * N * out_bytes,
    )

    out = pl.pallas_call(
        functools.partial(_matmul_bias_act_kernel, act=act),
        out_shape=jax.ShapeDtypeStruct((Mp, N), out_dtype),
        grid=(Mp // TM,),
        in_specs=[
            pl.BlockSpec((TM, K), lambda i: (i, 0)),   # streamed row tiles
            pl.BlockSpec((K, N), lambda i: (0, 0)),    # resident weights
            pl.BlockSpec((1, N), lambda i: (0, 0)),    # resident bias
        ],
        out_specs=pl.BlockSpec((TM, N), lambda i: (i, 0)),
        compiler_params=pltpu.CompilerParams(
            dimension_semantics=("parallel",)),        # megacore on v7x
        cost_estimate=cost,
    )(xb, wb, b2)

    if Mp != M:
        out = out[:M]
    return out


# ---------------------------------------------------------------------------
# Pallas kernel 2: fused tail
#   sigmoid( Linear( leaky_relu( conv1x1(z) ) ) )   for z: (N, HW, Cp) NHWC.
#   A few hundred FLOPs -> one launch instead of three 1-lane-wide ones.
# ---------------------------------------------------------------------------
def _tail_kernel(z_ref, w1_ref, b1_ref, wl_ref, bl_ref, o_ref):
    z = z_ref[...].astype(jnp.float32)                 # (N, HW, Cp)
    w1 = w1_ref[...]                                   # (1, Cp)
    s = jnp.sum(z * w1[None, :, :], axis=-1)           # 1x1 conv -> (N, HW)
    s = s + b1_ref[...]                                # bias (1,1) broadcast
    s = jnp.where(s >= 0, s, 0.2 * s)                  # leaky_relu(0.2)
    t = jnp.sum(s * wl_ref[...], axis=-1, keepdims=True) + bl_ref[...]  # Linear
    o_ref[...] = jax.nn.sigmoid(t).astype(o_ref.dtype)


def tail_fused(z_nhwc, w1, b1, wl, bl):
    """z_nhwc: (N, H, W, Cp) bf16 (padded channels); returns (N, 1) f32."""
    N, H, W, Cp = z_nhwc.shape
    HW = H * W
    z = z_nhwc.reshape(N, HW, Cp)
    return pl.pallas_call(
        _tail_kernel,
        out_shape=jax.ShapeDtypeStruct((N, 1), jnp.float32),
        grid=(1,),
        in_specs=[
            pl.BlockSpec((N, HW, Cp), lambda i: (0, 0, 0)),
            pl.BlockSpec((1, Cp), lambda i: (0, 0)),
            pl.BlockSpec((1, 1), lambda i: (0, 0)),
            pl.BlockSpec((1, HW), lambda i: (0, 0)),
            pl.BlockSpec((1, 1), lambda i: (0, 0)),
        ],
        out_specs=pl.BlockSpec((N, 1), lambda i: (0, 0)),
    )(z.astype(jnp.bfloat16),
      w1.reshape(1, Cp).astype(jnp.float32),
      jnp.asarray(b1, jnp.float32).reshape(1, 1),
      wl.reshape(1, HW).astype(jnp.float32),
      jnp.asarray(bl, jnp.float32).reshape(1, 1))


# ---------------------------------------------------------------------------
# DCNN parameter construction (mirrors the PyTorch __init__ shape logic)
# ---------------------------------------------------------------------------
def build_dcnn_params(key, h, w, in_c, min_c=8, max_c=128):
    params = []
    c = in_c
    hh, ww = h, w
    next_c = lambda cc: min_c if cc == in_c else min(max_c, cc * 2)

    while min(hh, ww) >= 4:
        oc = next_c(c)
        key, k1, k2 = jax.random.split(key, 3)
        bound = 1.0 / np.sqrt(c * 16)
        W = jax.random.uniform(k1, (oc, c, 4, 4), jnp.float32, -bound, bound)
        b = jax.random.uniform(k2, (oc,), jnp.float32, -bound, bound)
        params.append(("conv4", W, b))
        c = oc
        hh //= 4
        ww //= 4

    key, k1, k2 = jax.random.split(key, 3)
    bound = 1.0 / np.sqrt(c)
    W = jax.random.uniform(k1, (1, c, 1, 1), jnp.float32, -bound, bound)
    b = jax.random.uniform(k2, (1,), jnp.float32, -bound, bound)
    params.append(("conv1", W, b))

    key, k1, k2 = jax.random.split(key, 3)
    bound = 1.0 / np.sqrt(hh * ww)
    Wl = jax.random.uniform(k1, (1, hh * ww), jnp.float32, -bound, bound)
    bl = jax.random.uniform(k2, (1,), jnp.float32, -bound, bound)
    params.append(("linear", Wl, bl))
    return params


def prepare_params(params, in_c):
    """Torch OIHW params -> Pallas-ready (HWIO-flattened, channel-padded) mats.

    Input channels padded to a multiple of 8 (so K = 16*Cp is a multiple of
    128); output channels padded to 128 (lane-dense stores, full MXU columns).
    Padded channels stay exactly 0 through bias + leaky_relu.
    """
    conv4 = []
    c_real, c_pad = in_c, _round_up(in_c, 8)
    w1 = b1 = tail = None
    for kind, W, b in params:
        if kind == "conv4":
            oc = W.shape[0]
            ocp = _round_up(oc, 128)
            wm = jnp.transpose(W, (2, 3, 1, 0))                # (4,4,cin,oc)
            wm = jnp.pad(wm, ((0, 0), (0, 0),
                              (0, c_pad - c_real), (0, ocp - oc)))
            wm = wm.reshape(16 * c_pad, ocp).astype(jnp.bfloat16)
            bp = jnp.pad(b, (0, ocp - oc)).astype(jnp.float32)
            conv4.append((wm, bp))
            c_real, c_pad = oc, ocp
        elif kind == "conv1":
            w1 = jnp.pad(W.reshape(-1), (0, c_pad - c_real)).astype(jnp.float32)
            b1 = b.astype(jnp.float32)
        else:  # linear
            tail = (w1, b1, W.astype(jnp.float32), b.astype(jnp.float32))
    return conv4, tail


# ---------------------------------------------------------------------------
# Forward pass (NHWC-resident activations; glue is metadata reshapes only)
# ---------------------------------------------------------------------------
def dcnn_forward(x_nchw, conv4_params, tail_params, in_c):
    x = jnp.transpose(x_nchw, (0, 2, 3, 1)).astype(jnp.bfloat16)   # NHWC, once
    c_pad = _round_up(in_c, 8)
    if c_pad != in_c:
        x = jnp.pad(x, ((0, 0), (0, 0), (0, 0), (0, c_pad - in_c)))

    for wm, bp in conv4_params:
        n, H, W, Cp = x.shape
        OH, OW = H // 4, W // 4
        x = x[:, :OH * 4, :OW * 4, :]          # VALID-conv crop (no-op if %4==0)
        patches = (x.reshape(n, OH, 4, OW, 4, Cp)
                    .transpose(0, 1, 3, 2, 4, 5)
                    .reshape(n * OH * OW, 16 * Cp))
        out = matmul_bias_act(patches, wm, bp, "leaky_relu")   # (M, OCp) bf16
        x = out.reshape(n, OH, OW, wm.shape[1])

    w1, b1, wl, bl = tail_params
    return tail_fused(x, w1, b1, wl, bl)        # (N, 1) f32


# ---------------------------------------------------------------------------
# Pure-JAX f32 reference (correctness sanity check)
# ---------------------------------------------------------------------------
def ref_forward(x, params):
    out = x
    for kind, W, b in params:
        if kind in ("conv4", "conv1"):
            stride = 4 if kind == "conv4" else 1
            out = lax.conv_general_dilated(
                out, W, (stride, stride), "VALID",
                dimension_numbers=("NCHW", "OIHW", "NCHW"))
            out = out + b.reshape(1, -1, 1, 1)
            out = jnp.where(out >= 0, out, 0.2 * out)
        else:
            flat = out.reshape(out.shape[0], -1)
            out = jax.nn.sigmoid(flat @ W.T + b)
    return out


if __name__ == "__main__":
    key = jax.random.PRNGKey(0)
    kx, kp = jax.random.split(key)

    N, C, H, W = 2, 4, 16, 16
    x = jax.random.normal(kx, (N, C, H, W), dtype=jnp.float32)

    params = build_dcnn_params(kp, H, W, C, min_c=8, max_c=128)
    conv4_params, tail_params = prepare_params(params, C)

    fwd = jax.jit(lambda xx: dcnn_forward(xx, conv4_params, tail_params, C))
    out = jax.block_until_ready(fwd(x))

    ref = jax.block_until_ready(ref_forward(x, params))
    assert out.shape == (N, 1), out.shape
    # bf16 operands (f32 accumulation) vs an all-f32 reference -> loose tol.
    np.testing.assert_allclose(np.asarray(out), np.asarray(ref),
                               rtol=2e-2, atol=1e-2)
    print("KERNEL_OK")
</pallas_src>

<mosaic_0001>
module attributes {stable_mosaic.version = 11 : i64} {
  func.func @_matmul_bias_act_kernel(%arg0: i32, %arg1: memref<32x128xbf16, #tpu.memory_space<vmem>>, %arg2: memref<128x128xbf16, #tpu.memory_space<vmem>>, %arg3: memref<1x128xf32, #tpu.memory_space<vmem>>, %arg4: memref<32x128xbf16, #tpu.memory_space<vmem>>) attributes {dimension_semantics = [#tpu.dimension_semantics<parallel>], iteration_bounds = array<i64: 1>, scalar_prefetch = 0 : i64, scratch_operands = 0 : i64, tpu.core_type = #tpu.core_type<tc>, window_params = [{transform_indices = @transform_0, window_bounds = array<i64: 32, 128>}, {pipeline_mode = #tpu.pipeline_mode<synchronous>, transform_indices = @transform_1, window_bounds = array<i64: 128, 128>}, {pipeline_mode = #tpu.pipeline_mode<synchronous>, transform_indices = @transform_2, window_bounds = array<i64: 1, 128>}, {transform_indices = @transform_3, window_bounds = array<i64: 32, 128>}]} {
    %c0 = arith.constant 0 : index
    %c0_0 = arith.constant 0 : index
    %0 = vector.load %arg1[%c0, %c0_0] : memref<32x128xbf16, #tpu.memory_space<vmem>>, vector<32x128xbf16>
    %c0_1 = arith.constant 0 : index
    %c0_2 = arith.constant 0 : index
    %1 = vector.load %arg2[%c0_1, %c0_2] : memref<128x128xbf16, #tpu.memory_space<vmem>>, vector<128x128xbf16>
    %cst = arith.constant dense<0.000000e+00> : vector<32x128xf32>
    %2 = tpu.matmul %0, %1, %cst {dimension_numbers = #tpu.dot_dimension_numbers<[1], [0], [0], [1], [0, 0, 1, 1], [], []>} : vector<32x128xbf16>, vector<128x128xbf16>, vector<32x128xf32> -> vector<32x128xf32>
    %c0_3 = arith.constant 0 : index
    %c0_4 = arith.constant 0 : index
    %3 = vector.load %arg3[%c0_3, %c0_4] : memref<1x128xf32, #tpu.memory_space<vmem>>, vector<1x128xf32>
    %4 = vector.broadcast %3 : vector<1x128xf32> to vector<32x128xf32>
    %5 = arith.addf %2, %4 : vector<32x128xf32>
    %cst_5 = arith.constant 0.000000e+00 : f32
    %6 = vector.broadcast %cst_5 : f32 to vector<32x128xf32>
    %7 = arith.cmpf oge, %5, %6 : vector<32x128xf32>
    %cst_6 = arith.constant 2.000000e-01 : f32
    %8 = vector.broadcast %cst_6 : f32 to vector<32x128xf32>
    %9 = arith.mulf %8, %5 : vector<32x128xf32>
    %10 = arith.select %7, %5, %9 : vector<32x128xi1>, vector<32x128xf32>
    %11 = arith.truncf %10 : vector<32x128xf32> to vector<32x128xbf16>
    %c0_7 = arith.constant 0 : index
    %c0_8 = arith.constant 0 : index
    %12 = vector.load %arg4[%c0_7, %c0_8] : memref<32x128xbf16, #tpu.memory_space<vmem>>, vector<32x128xbf16>
    tpu.vector_store %arg4[%c0_7, %c0_8], %11 {strides = array<i32>} : memref<32x128xbf16, #tpu.memory_space<vmem>>, vector<32x128xbf16>,
    return
  }
  func.func @transform_0(%arg0: i32) -> (i32, i32) {
    %c0_i32 = arith.constant 0 : i32
    %c0_i32_0 = arith.constant 0 : i32
    return %arg0, %c0_i32 : i32, i32
  }
  func.func @transform_1(%arg0: i32) -> (i32, i32) {
    %c0_i32 = arith.constant 0 : i32
    %c0_i32_0 = arith.constant 0 : i32
    %c0_i32_1 = arith.constant 0 : i32
    return %c0_i32, %c0_i32_0 : i32, i32
  }
  func.func @transform_2(%arg0: i32) -> (i32, i32) {
    %c0_i32 = arith.constant 0 : i32
    %c0_i32_0 = arith.constant 0 : i32
    %c0_i32_1 = arith.constant 0 : i32
    return %c0_i32, %c0_i32_0 : i32, i32
  }
  func.func @transform_3(%arg0: i32) -> (i32, i32) {
    %c0_i32 = arith.constant 0 : i32
    %c0_i32_0 = arith.constant 0 : i32
    return %arg0, %c0_i32 : i32, i32
  }
}

module attributes {stable_mosaic.version = 11 : i64} {
  func.func @_matmul_bias_act_kernel(%arg0: i32, %arg1: memref<16x2048xbf16, #tpu.memory_space<vmem>>, %arg2: memref<2048x128xbf16, #tpu.memory_space<vmem>>, %arg3: memref<1x128xf32, #tpu.memory_space<vmem>>, %arg4: memref<16x128xbf16, #tpu.memory_space<vmem>>) attributes {dimension_semantics = [#tpu.dimension_semantics<parallel>], iteration_bounds = array<i64: 1>, scalar_prefetch = 0 : i64, scratch_operands = 0 : i64, tpu.core_type = #tpu.core_type<tc>, window_params = [{transform_indices = @transform_0, window_bounds = array<i64: 16, 2048>}, {pipeline_mode = #tpu.pipeline_mode<synchronous>, transform_indices = @transform_1, window_bounds = array<i64: 2048, 128>}, {pipeline_mode = #tpu.pipeline_mode<synchronous>, transform_indices = @transform_2, window_bounds = array<i64: 1, 128>}, {transform_indices = @transform_3, window_bounds = array<i64: 16, 128>}]} {
    %c0 = arith.constant 0 : index
    %c0_0 = arith.constant 0 : index
    %0 = vector.load %arg1[%c0, %c0_0] : memref<16x2048xbf16, #tpu.memory_space<vmem>>, vector<16x2048xbf16>
    %c0_1 = arith.constant 0 : index
    %c0_2 = arith.constant 0 : index
    %1 = vector.load %arg2[%c0_1, %c0_2] : memref<2048x128xbf16, #tpu.memory_space<vmem>>, vector<2048x128xbf16>
    %cst = arith.constant dense<0.000000e+00> : vector<16x128xf32>
    %2 = tpu.matmul %0, %1, %cst {dimension_numbers = #tpu.dot_dimension_numbers<[1], [0], [0], [1], [0, 0, 1, 1], [], []>} : vector<16x2048xbf16>, vector<2048x128xbf16>, vector<16x128xf32> -> vector<16x128xf32>
    %c0_3 = arith.constant 0 : index
    %c0_4 = arith.constant 0 : index
    %3 = vector.load %arg3[%c0_3, %c0_4] : memref<1x128xf32, #tpu.memory_space<vmem>>, vector<1x128xf32>
    %4 = vector.broadcast %3 : vector<1x128xf32> to vector<16x128xf32>
    %5 = arith.addf %2, %4 : vector<16x128xf32>
    %cst_5 = arith.constant 0.000000e+00 : f32
    %6 = vector.broadcast %cst_5 : f32 to vector<16x128xf32>
    %7 = arith.cmpf oge, %5, %6 : vector<16x128xf32>
    %cst_6 = arith.constant 2.000000e-01 : f32
    %8 = vector.broadcast %cst_6 : f32 to vector<16x128xf32>
    %9 = arith.mulf %8, %5 : vector<16x128xf32>
    %10 = arith.select %7, %5, %9 : vector<16x128xi1>, vector<16x128xf32>
    %11 = arith.truncf %10 : vector<16x128xf32> to vector<16x128xbf16>
    %c0_7 = arith.constant 0 : index
    %c0_8 = arith.constant 0 : index
    %12 = vector.load %arg4[%c0_7, %c0_8] : memref<16x128xbf16, #tpu.memory_space<vmem>>, vector<16x128xbf16>
    tpu.vector_store %arg4[%c0_7, %c0_8], %11 {strides = array<i32>} : memref<16x128xbf16, #tpu.memory_space<vmem>>, vector<16x128xbf16>,
    return
  }
  func.func @transform_0(%arg0: i32) -> (i32, i32) {
    %c0_i32 = arith.constant 0 : i32
    %c0_i32_0 = arith.constant 0 : i32
    return %arg0, %c0_i32 : i32, i32
  }
  func.func @transform_1(%arg0: i32) -> (i32, i32) {
    %c0_i32 = arith.constant 0 : i32
    %c0_i32_0 = arith.constant 0 : i32
    %c0_i32_1 = arith.constant 0 : i32
    return %c0_i32, %c0_i32_0 : i32, i32
  }
  func.func @transform_2(%arg0: i32) -> (i32, i32) {
    %c0_i32 = arith.constant 0 : i32
    %c0_i32_0 = arith.constant 0 : i32
    %c0_i32_1 = arith.constant 0 : i32
    return %c0_i32, %c0_i32_0 : i32, i32
  }
  func.func @transform_3(%arg0: i32) -> (i32, i32) {
    %c0_i32 = arith.constant 0 : i32
    %c0_i32_0 = arith.constant 0 : i32
    return %arg0, %c0_i32 : i32, i32
  }
}

module attributes {stable_mosaic.version = 11 : i64} {
  func.func @_tail_kernel(%arg0: i32, %arg1: memref<2x1x128xbf16, #tpu.memory_space<vmem>>, %arg2: memref<1x128xf32, #tpu.memory_space<vmem>>, %arg3: memref<1x1xf32, #tpu.memory_space<vmem>>, %arg4: memref<1x1xf32, #tpu.memory_space<vmem>>, %arg5: memref<1x1xf32, #tpu.memory_space<vmem>>, %arg6: memref<2x1xf32, #tpu.memory_space<vmem>>) attributes {dimension_semantics = [#tpu.dimension_semantics<arbitrary>], iteration_bounds = array<i64: 1>, scalar_prefetch = 0 : i64, scratch_operands = 0 : i64, tpu.core_type = #tpu.core_type<tc>, window_params = [{pipeline_mode = #tpu.pipeline_mode<synchronous>, transform_indices = @transform_0, window_bounds = array<i64: 2, 1, 128>}, {pipeline_mode = #tpu.pipeline_mode<synchronous>, transform_indices = @transform_1, window_bounds = array<i64: 1, 128>}, {pipeline_mode = #tpu.pipeline_mode<synchronous>, transform_indices = @transform_2, window_bounds = array<i64: 1, 1>}, {pipeline_mode = #tpu.pipeline_mode<synchronous>, transform_indices = @transform_3, window_bounds = array<i64: 1, 1>}, {pipeline_mode = #tpu.pipeline_mode<synchronous>, transform_indices = @transform_4, window_bounds = array<i64: 1, 1>}, {pipeline_mode = #tpu.pipeline_mode<synchronous>, transform_indices = @transform_5, window_bounds = array<i64: 2, 1>}]} {
    %c0 = arith.constant 0 : index
    %c0_0 = arith.constant 0 : index
    %c0_1 = arith.constant 0 : index
    %0 = vector.load %arg1[%c0, %c0_0, %c0_1] : memref<2x1x128xbf16, #tpu.memory_space<vmem>>, vector<2x1x128xbf16>
    %1 = arith.extf %0 : vector<2x1x128xbf16> to vector<2x1x128xf32>
    %c0_2 = arith.constant 0 : index
    %c0_3 = arith.constant 0 : index
    %2 = vector.load %arg2[%c0_2, %c0_3] : memref<1x128xf32, #tpu.memory_space<vmem>>, vector<1x128xf32>
    %3 = vector.shape_cast %2 : vector<1x128xf32> to vector<1x1x128xf32>
    %4 = vector.broadcast %3 : vector<1x1x128xf32> to vector<2x1x128xf32>
    %5 = arith.mulf %1, %4 : vector<2x1x128xf32>
    %cst = arith.constant dense<0.000000e+00> : vector<2x1xf32>
    %6 = vector.multi_reduction <add>, %5, %cst [2] : vector<2x1x128xf32> to vector<2x1xf32>
    %c0_4 = arith.constant 0 : index
    %c0_5 = arith.constant 0 : index
    %7 = vector.load %arg3[%c0_4, %c0_5] : memref<1x1xf32, #tpu.memory_space<vmem>>, vector<1x1xf32>
    %8 = vector.broadcast %7 : vector<1x1xf32> to vector<2x1xf32>
    %9 = arith.addf %6, %8 : vector<2x1xf32>
    %cst_6 = arith.constant 0.000000e+00 : f32
    %10 = vector.broadcast %cst_6 : f32 to vector<2x1xf32>
    %11 = arith.cmpf oge, %9, %10 : vector<2x1xf32>
    %cst_7 = arith.constant 2.000000e-01 : f32
    %12 = vector.broadcast %cst_7 : f32 to vector<2x1xf32>
    %13 = arith.mulf %12, %9 : vector<2x1xf32>
    %14 = arith.select %11, %9, %13 : vector<2x1xi1>, vector<2x1xf32>
    %c0_8 = arith.constant 0 : index
    %c0_9 = arith.constant 0 : index
    %15 = vector.load %arg4[%c0_8, %c0_9] : memref<1x1xf32, #tpu.memory_space<vmem>>, vector<1x1xf32>
    %16 = vector.broadcast %15 : vector<1x1xf32> to vector<2x1xf32>
    %17 = arith.mulf %14, %16 : vector<2x1xf32>
    %cst_10 = arith.constant dense<0.000000e+00> : vector<2xf32>
    %18 = vector.multi_reduction <add>, %17, %cst_10 [1] : vector<2x1xf32> to vector<2xf32>
    %19 = vector.shape_cast %18 : vector<2xf32> to vector<2x1xf32>
    %c0_11 = arith.constant 0 : index
    %c0_12 = arith.constant 0 : index
    %20 = vector.load %arg5[%c0_11, %c0_12] : memref<1x1xf32, #tpu.memory_space<vmem>>, vector<1x1xf32>
    %21 = vector.broadcast %20 : vector<1x1xf32> to vector<2x1xf32>
    %22 = arith.addf %19, %21 : vector<2x1xf32>
    %23 = arith.negf %22 : vector<2x1xf32>
    %24 = math.exp %23 : vector<2x1xf32>
    %cst_13 = arith.constant 1.000000e+00 : f32
    %25 = vector.broadcast %cst_13 : f32 to vector<2x1xf32>
    %26 = arith.addf %25, %24 : vector<2x1xf32>
    %27 = arith.divf %25, %26 : vector<2x1xf32>
    %c0_14 = arith.constant 0 : index
    %c0_15 = arith.constant 0 : index
    %28 = vector.load %arg6[%c0_14, %c0_15] : memref<2x1xf32, #tpu.memory_space<vmem>>, vector<2x1xf32>
    tpu.vector_store %arg6[%c0_14, %c0_15], %27 {strides = array<i32>} : memref<2x1xf32, #tpu.memory_space<vmem>>, vector<2x1xf32>,
    return
  }
  func.func @transform_0(%arg0: i32) -> (i32, i32, i32) {
    %c0_i32 = arith.constant 0 : i32
    %c0_i32_0 = arith.constant 0 : i32
    %c0_i32_1 = arith.constant 0 : i32
    %c0_i32_2 = arith.constant 0 : i32
    return %c0_i32, %c0_i32_0, %c0_i32_1 : i32, i32, i32
  }
  func.func @transform_1(%arg0: i32) -> (i32, i32) {
    %c0_i32 = arith.constant 0 : i32
    %c0_i32_0 = arith.constant 0 : i32
    %c0_i32_1 = arith.constant 0 : i32
    return %c0_i32, %c0_i32_0 : i32, i32
  }
  func.func @transform_2(%arg0: i32) -> (i32, i32) {
    %c0_i32 = arith.constant 0 : i32
    %c0_i32_0 = arith.constant 0 : i32
    %c0_i32_1 = arith.constant 0 : i32
    return %c0_i32, %c0_i32_0 : i32, i32
  }
  func.func @transform_3(%arg0: i32) -> (i32, i32) {
    %c0_i32 = arith.constant 0 : i32
    %c0_i32_0 = arith.constant 0 : i32
    %c0_i32_1 = arith.constant 0 : i32
    return %c0_i32, %c0_i32_0 : i32, i32
  }
  func.func @transform_4(%arg0: i32) -> (i32, i32) {
    %c0_i32 = arith.constant 0 : i32
    %c0_i32_0 = arith.constant 0 : i32
    %c0_i32_1 = arith.constant 0 : i32
    return %c0_i32, %c0_i32_0 : i32, i32
  }
  func.func @transform_5(%arg0: i32) -> (i32, i32) {
    %c0_i32 = arith.constant 0 : i32
    %c0_i32_0 = arith.constant 0 : i32
    %c0_i32_1 = arith.constant 0 : i32
    return %c0_i32, %c0_i32_0 : i32, i32
  }
}

</mosaic_0001>

<bundles_post_ra>
// kernel: _lambda_.5
= control target key start
LH: loop header
LB: loop body
LE: loop exit
PB: predicated region body
PF: predicated region fallthrough
CT: control target
= control target key end

     0   :  { %vm33_vm0 = vcmask 1040384   ;;  %vm96_vm3 = vcmask 1041409   ;;  %vm99_vm4 = vcmask 1024   ;;  %s169_s0 = inlined_call_operand.vmem [shape: bf16[2,1,128], index: 0, kind: input, shape index: {}]   ;;  %s170_s1 = inlined_call_operand.vmem [shape: f32[1,128], index: 1, kind: input, shape index: {}]   ;;  %s171_s2 = inlined_call_operand.<no memory space> [shape: f32[1,1], index: 2, kind: input, shape index: {}]   ;;  %s172_s3 = inlined_call_operand.<no memory space> [shape: f32[1,1], index: 3, kind: input, shape index: {}]   ;;  %s173_s4 = inlined_call_operand.<no memory space> [shape: f32[1,1], index: 4, kind: input, shape index: {}]   ;;  %s174_s5 = inlined_call_operand.vmem [shape: f32[2,1], index: 5, kind: output, shape index: {}]  }
   0x1   :  { %v27_v0 = vld [vmem:[%s169_s0 + $0x1] sm:$0x1]  ;;  %v30_v1 = vld [vmem:[%s170_s1] sm:$0x1]  ;;  %v10_v3 = vstv %s171_s2  ;;  %v12_v6 = vstv %s172_s3 }
   0x2   :  { %v26_v2 = vld [vmem:[%s169_s0] sm:$0x1]  ;;  %v29_v4 = vunpack.c.l.bf16 %v27_v0  ;;  %11 = vst [vmem:[#allocation2] sm:$0x1] %v10_v3  ;;  %13 = vst [vmem:[#allocation3] sm:$0x1] %v12_v6  ;;  %v14_v13 = vstv %s173_s4 }
   0x3   :  { %v28_v5 = vunpack.c.l.bf16 %v26_v2  ;;  %15 = vst [vmem:[#allocation4] sm:$0x1] %v14_v13 }
   0x4   :  { %v32_v7 = vmul.f32 %v30_v1, %v29_v4 }
   0x5   :  { %v31_v8 = vmul.f32 %v30_v1, %v28_v5 }
   0x6   :  { %v37_v9 = vsel %vm33_vm0, %v32_v7, 0.0 }
   0x7   :  { %38 = vadd.xlane.f32.xlu0 %v37_v9  ;;  %v34_v10 = vsel %vm33_vm0, %v31_v8, 0.0 }
   0x9   :  { %v105_v11 = vld [vmem:[#allocation2] ss:$0 sm:$0xff]  ;;  %v106_v12 = vld [vmem:[#allocation3] ss:$0 sm:$0xff] }
   0xa   :  { %47 = vbcast.lane.b32.xlu1 %v105_v11, 256  ;;  %v107_v21 = vld [vmem:[#allocation4] ss:$0 sm:$0xff] }
   0xb   :  { %35 = vadd.xlane.f32.xlu0 %v34_v10 }
   0xe   :  { %65 = vbcast.lane.b32.xlu1 %v106_v12, 256 }
  0x7c   :  { %v48_v14 = vpop.permute.xlu1 %47 }
  0x80   :  { %v66_v18 = vpop.permute.xlu1 %65 }
  0x94   :  { %v39_v15 = vpop.xlane.xlu0 %38 }
  0x95   :  { %v51_v16 = vadd.f32 %v48_v14, %v39_v15 }
  0x97   :  { %v55_v17 = vmul.f32 0.2, %v51_v16  ;;  %vm53_vm1 = vcmp.ge.f32.partialorder %v51_v16, 0.0 }
  0x98   :  { %v36_v19 = vpop.xlane.xlu0 %35 }
  0x99   :  { %v50_v20 = vadd.f32 %v48_v14, %v36_v19  ;;  %v57_v22 = vsel %vm53_vm1, %v51_v16, %v55_v17 }
  0x9a   :  { %v69_v23 = vmul.f32 %v66_v18, %v57_v22 }
  0x9b   :  { %v54_v24 = vmul.f32 0.2, %v50_v20  ;;  %vm52_vm2 = vcmp.ge.f32.partialorder %v50_v20, 0.0 }
  0x9c   :  { %v80_v25 = vadd.f32 %v107_v21, %v69_v23 }
  0x9d   :  { %v56_v26 = vsel %vm52_vm2, %v50_v20, %v54_v24 }
  0x9e   :  { %v68_v27 = vmul.f32 %v66_v18, %v56_v26  ;;  %v109_v28 = vmul.f32 -1.442695, %v80_v25 }
  0xa0   :  { %v79_v29 = vadd.f32 %v107_v21, %v68_v27  ;;  %110 = vpow2.f32 %v109_v28 }
  0xa2   :  { %v108_v30 = vmul.f32 -1.442695, %v79_v29 }
  0xa4   :  { %112 = vpow2.f32 %v108_v30 }
  0xaa   :  { %v111_v31 = vpop.eup %110 }
  0xab   :  { %v88_v32 = vadd.f32 1.0, %v111_v31 }
  0xad   :  { %114 = vrcp.f32 %v88_v32 }
  0xae   :  { %v113_v33 = vpop.eup %112 }
  0xaf   :  { %v87_v34 = vadd.f32 1.0, %v113_v33 }
  0xb1   :  { %116 = vrcp.f32 %v87_v34 }
  0xb7   :  { %v115_v35 = vpop.eup %114 }
  0xb8   :  { %v95_v36 = vrot.slane %v115_v35, 7 }
  0xbb   :  { %v117_v37 = vpop.eup %116 }
  0xbc   :  { %v97_v38 = vsel %vm96_vm3, %v95_v36, %v117_v37 }
  0xbd   :  { %100 = vst.msk [vmem:[%s174_s5] sm:$0x3] %vm99_vm4, %v97_v38 }

// kernel: _lambda_.3
= control target key start
LH: loop header
LB: loop body
LE: loop exit
PB: predicated region body
PF: predicated region fallthrough
CT: control target
= control target key end

     0   :  { %s316_s1 = inlined_call_operand.vmem [shape: bf16[128,128], index: 1, kind: input, shape index: {}]   ;;  %s317_s0 = inlined_call_operand.vmem [shape: bf16[32,128], index: 0, kind: input, shape index: {}]   ;;  %s318_s2 = inlined_call_operand.vmem [shape: f32[1,128], index: 2, kind: input, shape index: {}]   ;;  %s319_s3 = inlined_call_operand.vmem [shape: bf16[32,128], index: 3, kind: output, shape index: {}]  }
   0x1   :  { %v247_v0 = vld [vmem:[%s316_s1] sm:$0xff]   ;;  %v248_v1 = vld [vmem:[%s316_s1 + $0x8] sm:$0xff]   ;;  %v249_v2 = vld [vmem:[%s316_s1 + $0x10] sm:$0xff]  }
   0x2   :  { %227 = vmatprep.subr.bf16.mxu0 %v247_v0  ;;  %v250_v3 = vld [vmem:[%s316_s1 + $0x18] sm:$0xff]   ;;  %v255_v4 = vld [vmem:[%s317_s0] sm:$0xff]   ;;  %v252_v6 = vld [vmem:[%s316_s1 + $0x28] sm:$0xff]  }
   0x3   :  { %228 = vmatpush3.bf16.msra.mxu0 %v247_v0  ;;  %243 = vmatprep.mubr.bf16.mxu0 %v255_v4  ;;  %v251_v5 = vld [vmem:[%s316_s1 + $0x20] sm:$0xff]   ;;  %v253_v7 = vld [vmem:[%s316_s1 + $0x30] sm:$0xff]   ;;  %v254_v8 = vld [vmem:[%s316_s1 + $0x38] sm:$0xff]  }
   0x4   :  { %229 = vmatprep.subr.bf16.mxu0 %v248_v1  ;;  %v256_v9 = vld [vmem:[%s317_s0 + $0x8] sm:$0xff]   ;;  %v187_v10 = vld [vmem:[%s318_s2] ss:$0 sm:$0xff] }
   0x7   :  { %230 = vmatpush3.bf16.msra.mxu0 %v248_v1 }
   0x8   :  { %231 = vmatprep.subr.bf16.mxu0 %v249_v2 }
   0xb   :  { %232 = vmatpush3.bf16.msra.mxu0 %v249_v2 }
   0xc   :  { %233 = vmatprep.subr.bf16.mxu0 %v250_v3 }
   0xf   :  { %234 = vmatpush3.bf16.msra.mxu0 %v250_v3 }
  0x10   :  { %235 = vmatprep.subr.bf16.mxu0 %v251_v5 }
  0x13   :  { %236 = vmatpush3.bf16.msra.mxu0 %v251_v5 }
  0x14   :  { %237 = vmatprep.subr.bf16.mxu0 %v252_v6 }
  0x17   :  { %238 = vmatpush3.bf16.msra.mxu0 %v252_v6 }
  0x18   :  { %239 = vmatprep.subr.bf16.mxu0 %v253_v7 }
  0x1b   :  { %240 = vmatpush3.bf16.msra.mxu0 %v253_v7 }
  0x1c   :  { %241 = vmatprep.subr.bf16.mxu0 %v254_v8 }
  0x1f   :  { %242 = vmatpush3.bf16.msra.mxu0 %v254_v8 }
  0x22   :  { %244 = vmatmul.mubr.bf16.vlgmr.msra.gmra.mrb[0].mxu0 %v256_v9 }
  0xf5   :  { %v245_v11 = vpop.f32.mrb[0].mxu0 }
  0xf6   :  { %v145_v12 = vadd.f32 %v245_v11, %v187_v10  ;;  %v136_v13 = vpop.f32.mrb[1].mxu0 }
  0xf7   :  { %v137_v14 = vadd.f32 %v187_v10, %v136_v13  ;;  %v246_v15 = vpop.f32.mrb[2].mxu0 }
  0xf8   :  { %v157_v16 = vmul.f32 0.2, %v145_v12  ;;  %v148_v17 = vadd.f32 %v246_v15, %v187_v10  ;;  %v139_v18 = vpop.f32.mrb[3].mxu0  ;;  %vm153_vm0 = vcmp.ge.f32.partialorder %v145_v12, 0.0 }
  0xf9   :  { %v155_v19 = vmul.f32 0.2, %v137_v14  ;;  %v140_v20 = vadd.f32 %v187_v10, %v139_v18  ;;  %vm151_vm1 = vcmp.ge.f32.partialorder %v137_v14, 0.0 }
  0xfa   :  { %vm154_vm2 = vcmp.ge.f32.partialorder %v148_v17, 0.0  ;;  %v158_v21 = vmul.f32 0.2, %v148_v17  ;;  %v161_v23 = vsel %vm153_vm0, %v145_v12, %v157_v16 }
  0xfb   :  { %vm152_vm3 = vcmp.ge.f32.partialorder %v140_v20, 0.0  ;;  %v156_v22 = vmul.f32 0.2, %v140_v20  ;;  %v159_v25 = vsel %vm151_vm1, %v137_v14, %v155_v19 }
  0xfc   :  { %v162_v24 = vsel %vm154_vm2, %v148_v17, %v158_v21 }
  0xfd   :  { %v214_v26 = vpack.c.bf16 %v162_v24, %v161_v23  ;;  %v160_v27 = vsel %vm152_vm3, %v140_v20, %v156_v22 }
  0xfe   :  { %v209_v28 = vpack.c.bf16 %v160_v27, %v159_v25 }
  0xff   :  { %216 = vst [vmem:[%s319_s3 + $0x8] sm:$0xff] %v214_v26  }
 0x100   :  { %210 = vst [vmem:[%s319_s3] sm:$0xff] %v209_v28  }

// kernel: _lambda_.4
= control target key start
LH: loop header
LB: loop body
LE: loop exit
PB: predicated region body
PF: predicated region fallthrough
CT: control target
= control target key end

     0   :  { %s2406_s1 = inlined_call_operand.vmem [shape: bf16[2048,128], index: 1, kind: input, shape index: {}]   ;;  %s2407_s0 = inlined_call_operand.vmem [shape: bf16[16,2048], index: 0, kind: input, shape index: {}]   ;;  %s2408_s2 = inlined_call_operand.vmem [shape: f32[1,128], index: 2, kind: input, shape index: {}]   ;;  %s2409_s3 = inlined_call_operand.vmem [shape: bf16[16,128], index: 3, kind: output, shape index: {}]  }
   0x1   :  { %v1820_v0 = vld [vmem:[%s2406_s1 + $0x40] sm:$0xff]   ;;  %v1824_v4 = vld [vmem:[%s2406_s1 + $0x48] sm:$0xff]   ;;  %v1828_v8 = vld [vmem:[%s2406_s1 + $0x50] sm:$0xff]  }
   0x2   :  { %v1821_v1 = vld [vmem:[%s2406_s1 + $0xc0] sm:$0xff]   ;;  %1644 = vmatprep.subr.bf16.mxu0 %v1820_v0  ;;  %v1825_v5 = vld [vmem:[%s2406_s1 + $0xc8] sm:$0xff]   ;;  %v1829_v9 = vld [vmem:[%s2406_s1 + $0xd0] sm:$0xff]  }
   0x3   :  { %v1822_v2 = vld [vmem:[%s2406_s1] sm:$0xff]   ;;  %1666 = vmatprep.subr.bf16.mxu1 %v1821_v1  ;;  %v1826_v6 = vld [vmem:[%s2406_s1 + $0x8] sm:$0xff]   ;;  %v1830_v10 = vld [vmem:[%s2406_s1 + $0x10] sm:$0xff]  }
   0x4   :  { %v1823_v3 = vld [vmem:[%s2406_s1 + $0x80] sm:$0xff]   ;;  %1645 = vmatpush3.bf16.msra.mxu0 %v1822_v2  ;;  %v1827_v7 = vld [vmem:[%s2406_s1 + $0x88] sm:$0xff]   ;;  %v1831_v11 = vld [vmem:[%s2406_s1 + $0x90] sm:$0xff]  }
   0x5   :  { %1667 = vmatpush3.bf16.msra.mxu1 %v1823_v3  ;;  %1646 = vmatprep.subr.bf16.mxu0 %v1824_v4  ;;  %v1832_v12 = vld [vmem:[%s2406_s1 + $0x58] sm:$0xff]   ;;  %v1836_v16 = vld [vmem:[%s2406_s1 + $0x60] sm:$0xff]   ;;  %v1840_v20 = vld [vmem:[%s2406_s1 + $0x68] sm:$0xff]  }
   0x6   :  { %1668 = vmatprep.subr.bf16.mxu1 %v1825_v5  ;;  %v1833_v13 = vld [vmem:[%s2406_s1 + $0xd8] sm:$0xff]   ;;  %v1837_v17 = vld [vmem:[%s2406_s1 + $0xe0] sm:$0xff]   ;;  %v1841_v21 = vld [vmem:[%s2406_s1 + $0xe8] sm:$0xff]  }
   0x7   :  { %v1834_v14 = vld [vmem:[%s2406_s1 + $0x18] sm:$0xff]   ;;  %v1838_v18 = vld [vmem:[%s2406_s1 + $0x20] sm:$0xff]   ;;  %v1842_v22 = vld [vmem:[%s2406_s1 + $0x28] sm:$0xff]  }
   0x8   :  { %1647 = vmatpush3.bf16.msra.mxu0 %v1826_v6  ;;  %v1835_v15 = vld [vmem:[%s2406_s1 + $0x98] sm:$0xff]   ;;  %v1839_v19 = vld [vmem:[%s2406_s1 + $0xa0] sm:$0xff]   ;;  %v1843_v23 = vld [vmem:[%s2406_s1 + $0xa8] sm:$0xff]  }
   0x9   :  { %1669 = vmatpush3.bf16.msra.mxu1 %v1827_v7  ;;  %1648 = vmatprep.subr.bf16.mxu0 %v1828_v8  ;;  %v1844_v24 = vld [vmem:[%s2406_s1 + $0x70] sm:$0xff]   ;;  %v1848_v28 = vld [vmem:[%s2406_s1 + $0x78] sm:$0xff]   ;;  %v15_v32 = vld [vmem:[%s2407_s0] sm:$0xff] }
   0xa   :  { %1670 = vmatprep.subr.bf16.mxu1 %v1829_v9  ;;  %v1845_v25 = vld [vmem:[%s2406_s1 + $0xf0] sm:$0xff]   ;;  %v1849_v29 = vld [vmem:[%s2406_s1 + $0xf8] sm:$0xff]   ;;  %v23_v33 = vld [vmem:[%s2407_s0 + $0x40] sm:$0xff] }
   0xb   :  { %v1846_v26 = vld [vmem:[%s2406_s1 + $0x30] sm:$0xff]   ;;  %v1850_v30 = vld [vmem:[%s2406_s1 + $0x38] sm:$0xff]   ;;  %v16_v34 = vld [vmem:[%s2407_s0 + $0x8] sm:$0xff]  ;;  %v1491_v35 = vcombine.low %v15_v32, %v23_v33  ;;  %v1492_v36 = vcombine.high %v15_v32, %v23_v33 }
   0xc   :  { %1649 = vmatpush3.bf16.msra.mxu0 %v1830_v10  ;;  %v1847_v27 = vld [vmem:[%s2406_s1 + $0xb0] sm:$0xff]   ;;  %v1851_v31 = vld [vmem:[%s2406_s1 + $0xb8] sm:$0xff]   ;;  %v24_v37 = vld [vmem:[%s2407_s0 + $0x48] sm:$0xff] }
   0xd   :  { %1671 = vmatpush3.bf16.msra.mxu1 %v1831_v11  ;;  %1650 = vmatprep.subr.bf16.mxu0 %v1832_v12  ;;  %v1493_v38 = vcombine.low %v16_v34, %v24_v37  ;;  %v1494_v39 = vcombine.high %v16_v34, %v24_v37  ;;  %v1852_v40 = vld [vmem:[%s2406_s1 + $0x140] sm:$0xff]   ;;  %v1856_v44 = vld [vmem:[%s2406_s1 + $0x148] sm:$0xff]   ;;  %v1860_v48 = vld [vmem:[%s2406_s1 + $0x150] sm:$0xff]  }
   0xe   :  { %1672 = vmatprep.subr.bf16.mxu1 %v1833_v13  ;;  %1174 = vmatprep.mubr.bf16.mxu0 %v1492_v36  ;;  %v1853_v41 = vld [vmem:[%s2406_s1 + $0x1c0] sm:$0xff]   ;;  %v1857_v45 = vld [vmem:[%s2406_s1 + $0x1c8] sm:$0xff]   ;;  %v1861_v49 = vld [vmem:[%s2406_s1 + $0x1d0] sm:$0xff]  }
   0xf   :  { %1215 = vmatprep.mubr.bf16.mxu1 %v1494_v39  ;;  %v1854_v42 = vld [vmem:[%s2406_s1 + $0x100] sm:$0xff]   ;;  %v1858_v46 = vld [vmem:[%s2406_s1 + $0x108] sm:$0xff]   ;;  %v1862_v50 = vld [vmem:[%s2406_s1 + $0x110] sm:$0xff]  }
  0x10   :  { %1651 = vmatpush3.bf16.msra.mxu0 %v1834_v14  ;;  %v1855_v43 = vld [vmem:[%s2406_s1 + $0x180] sm:$0xff]   ;;  %v1859_v47 = vld [vmem:[%s2406_s1 + $0x188] sm:$0xff]   ;;  %v1863_v51 = vld [vmem:[%s2406_s1 + $0x190] sm:$0xff]  }
  0x11   :  { %1673 = vmatpush3.bf16.msra.mxu1 %v1835_v15  ;;  %1652 = vmatprep.subr.bf16.mxu0 %v1836_v16  ;;  %v1864_v52 = vld [vmem:[%s2406_s1 + $0x158] sm:$0xff]   ;;  %v1868_v56 = vld [vmem:[%s2406_s1 + $0x160] sm:$0xff]   ;;  %v1872_v60 = vld [vmem:[%s2406_s1 + $0x168] sm:$0xff]  }
  0x12   :  { %1674 = vmatprep.subr.bf16.mxu1 %v1837_v17  ;;  %v1865_v53 = vld [vmem:[%s2406_s1 + $0x1d8] sm:$0xff]   ;;  %v1869_v57 = vld [vmem:[%s2406_s1 + $0x1e0] sm:$0xff]   ;;  %v1873_v61 = vld [vmem:[%s2406_s1 + $0x1e8] sm:$0xff]  }
  0x13   :  { %v1866_v54 = vld [vmem:[%s2406_s1 + $0x118] sm:$0xff]   ;;  %v1870_v58 = vld [vmem:[%s2406_s1 + $0x120] sm:$0xff]   ;;  %v1874_v62 = vld [vmem:[%s2406_s1 + $0x128] sm:$0xff]  }
  0x14   :  { %1653 = vmatpush3.bf16.msra.mxu0 %v1838_v18  ;;  %v1867_v55 = vld [vmem:[%s2406_s1 + $0x198] sm:$0xff]   ;;  %v1871_v59 = vld [vmem:[%s2406_s1 + $0x1a0] sm:$0xff]   ;;  %v1875_v63 = vld [vmem:[%s2406_s1 + $0x1a8] sm:$0xff]  }
  0x15   :  { %1675 = vmatpush3.bf16.msra.mxu1 %v1839_v19  ;;  %1654 = vmatprep.subr.bf16.mxu0 %v1840_v20  ;;  %v1876_v0 = vld [vmem:[%s2406_s1 + $0x170] sm:$0xff]   ;;  %v1880_v4 = vld [vmem:[%s2406_s1 + $0x178] sm:$0xff]   ;;  %v1884_v16 = vld [vmem:[%s2406_s1 + $0x240] sm:$0xff]  }
  0x16   :  { %1676 = vmatprep.subr.bf16.mxu1 %v1841_v21  ;;  %v1877_v1 = vld [vmem:[%s2406_s1 + $0x1f0] sm:$0xff]   ;;  %v1881_v5 = vld [vmem:[%s2406_s1 + $0x1f8] sm:$0xff]   ;;  %v1885_v17 = vld [vmem:[%s2406_s1 + $0x2c0] sm:$0xff]  }
  0x17   :  { %v1878_v2 = vld [vmem:[%s2406_s1 + $0x130] sm:$0xff]   ;;  %v1882_v6 = vld [vmem:[%s2406_s1 + $0x138] sm:$0xff]   ;;  %v1886_v18 = vld [vmem:[%s2406_s1 + $0x200] sm:$0xff]  }
  0x18   :  { %1655 = vmatpush3.bf16.msra.mxu0 %v1842_v22  ;;  %v1879_v3 = vld [vmem:[%s2406_s1 + $0x1b0] sm:$0xff]   ;;  %v1883_v7 = vld [vmem:[%s2406_s1 + $0x1b8] sm:$0xff]   ;;  %v1887_v19 = vld [vmem:[%s2406_s1 + $0x280] sm:$0xff]  }
  0x19   :  { %1677 = vmatpush3.bf16.msra.mxu1 %v1843_v23  ;;  %1656 = vmatprep.subr.bf16.mxu0 %v1844_v24  ;;  %v17_v8 = vld [vmem:[%s2407_s0 + $0x10] sm:$0xff]  ;;  %v18_v12 = vld [vmem:[%s2407_s0 + $0x18] sm:$0xff]  ;;  %v1888_v20 = vld [vmem:[%s2406_s1 + $0x248] sm:$0xff]  }
  0x1a   :  { %1678 = vmatprep.subr.bf16.mxu1 %v1845_v25  ;;  %v25_v9 = vld [vmem:[%s2407_s0 + $0x50] sm:$0xff]  ;;  %v26_v13 = vld [vmem:[%s2407_s0 + $0x58] sm:$0xff]  ;;  %v1889_v21 = vld [vmem:[%s2406_s1 + $0x2c8] sm:$0xff]  }
  0x1b   :  { %v1495_v10 = vcombine.low %v17_v8, %v25_v9  ;;  %v1496_v11 = vcombine.high %v17_v8, %v25_v9  ;;  %v1497_v14 = vcombine.low %v18_v12, %v26_v13  ;;  %v1498_v15 = vcombine.high %v18_v12, %v26_v13  ;;  %v1890_v22 = vld [vmem:[%s2406_s1 + $0x208] sm:$0xff]   ;;  %v1892_v24 = vld [vmem:[%s2406_s1 + $0x250] sm:$0xff]   ;;  %v1900_v32 = vld [vmem:[%s2406_s1 + $0x260] sm:$0xff]  }
  0x1c   :  { %1657 = vmatpush3.bf16.msra.mxu0 %v1846_v26  ;;  %v1891_v23 = vld [vmem:[%s2406_s1 + $0x288] sm:$0xff]   ;;  %v1893_v25 = vld [vmem:[%s2406_s1 + $0x2d0] sm:$0xff]   ;;  %v1901_v33 = vld [vmem:[%s2406_s1 + $0x2e0] sm:$0xff]  }
  0x1d   :  { %1679 = vmatpush3.bf16.msra.mxu1 %v1847_v27  ;;  %1658 = vmatprep.subr.bf16.mxu0 %v1848_v28  ;;  %v1894_v26 = vld [vmem:[%s2406_s1 + $0x210] sm:$0xff]   ;;  %v1896_v28 = vld [vmem:[%s2406_s1 + $0x258] sm:$0xff]   ;;  %v1902_v34 = vld [vmem:[%s2406_s1 + $0x220] sm:$0xff]  }
  0x1e   :  { %1680 = vmatprep.subr.bf16.mxu1 %v1849_v29  ;;  %v1895_v27 = vld [vmem:[%s2406_s1 + $0x290] sm:$0xff]   ;;  %v1897_v29 = vld [vmem:[%s2406_s1 + $0x2d8] sm:$0xff]   ;;  %v1904_v36 = vld [vmem:[%s2406_s1 + $0x268] sm:$0xff]  }
  0x1f   :  { %v1905_v37 = vld [vmem:[%s2406_s1 + $0x2e8] sm:$0xff]   ;;  %v1932_v8 = vld [vmem:[%s2406_s1 + $0x360] sm:$0xff]  }
  0x20   :  { %1659 = vmatpush3.bf16.msra.mxu0 %v1850_v30  ;;  %v1898_v30 = vld [vmem:[%s2406_s1 + $0x218] sm:$0xff]   ;;  %v1907_v39 = vld [vmem:[%s2406_s1 + $0x2a8] sm:$0xff]   ;;  %v1933_v9 = vld [vmem:[%s2406_s1 + $0x3e0] sm:$0xff]  }
  0x21   :  { %1681 = vmatpush3.bf16.msra.mxu1 %v1851_v31  ;;  %1688 = vmatprep.subr.bf16.mxu0 %v1852_v40  ;;  %v1899_v31 = vld [vmem:[%s2406_s1 + $0x298] sm:$0xff]   ;;  %v1908_v40 = vld [vmem:[%s2406_s1 + $0x270] sm:$0xff]   ;;  %v1936_v12 = vld [vmem:[%s2406_s1 + $0x368] sm:$0xff]  }
  0x22   :  { %1710 = vmatprep.subr.bf16.mxu1 %v1853_v41  ;;  %v1909_v41 = vld [vmem:[%s2406_s1 + $0x2f0] sm:$0xff]   ;;  %v1937_v13 = vld [vmem:[%s2406_s1 + $0x3e8] sm:$0xff]  }
  0x23   :  { %1175 = vmatmul.mubr.bf16.vlgmr.msra.gmra.mrb[0].mxu0 %v1491_v35  ;;  %v1903_v35 = vld [vmem:[%s2406_s1 + $0x2a0] sm:$0xff]  }
  0x24   :  { %1216 = vmatmul.mubr.bf16.vlgmr.msra.gmra.mrb[0].mxu1 %v1493_v38  ;;  %1689 = vmatpush3.bf16.msra.mxu0 %v1854_v42  ;;  %v1906_v38 = vld [vmem:[%s2406_s1 + $0x228] sm:$0xff]   ;;  %v1910_v42 = vld [vmem:[%s2406_s1 + $0x230] sm:$0xff]  }
  0x25   :  { %1711 = vmatpush3.bf16.msra.mxu1 %v1855_v43  ;;  %1690 = vmatprep.subr.bf16.mxu0 %v1856_v44  ;;  %v1911_v43 = vld [vmem:[%s2406_s1 + $0x2b0] sm:$0xff]   ;;  %v1912_v44 = vld [vmem:[%s2406_s1 + $0x278] sm:$0xff]  }
  0x26   :  { %1712 = vmatprep.subr.bf16.mxu1 %v1857_v45  ;;  %1256 = vmatprep.mubr.bf16.mxu0 %v1496_v11  ;;  %v1913_v45 = vld [vmem:[%s2406_s1 + $0x2f8] sm:$0xff]   ;;  %v1935_v11 = vld [vmem:[%s2406_s1 + $0x3a0] sm:$0xff]  }
  0x27   :  { %1297 = vmatprep.mubr.bf16.mxu1 %v1498_v15  ;;  %v1939_v15 = vld [vmem:[%s2406_s1 + $0x3a8] sm:$0xff]  }
  0x28   :  { %1691 = vmatpush3.bf16.msra.mxu0 %v1858_v46  ;;  %v1914_v46 = vld [vmem:[%s2406_s1 + $0x238] sm:$0xff]  }
  0x29   :  { %1713 = vmatpush3.bf16.msra.mxu1 %v1859_v47  ;;  %1692 = vmatprep.subr.bf16.mxu0 %v1860_v48  ;;  %v1915_v47 = vld [vmem:[%s2406_s1 + $0x2b8] sm:$0xff]   ;;  %v19_v48 = vld [vmem:[%s2407_s0 + $0x20] sm:$0xff] }
  0x2a   :  { %1714 = vmatprep.subr.bf16.mxu1 %v1861_v49  ;;  %v27_v49 = vld [vmem:[%s2407_s0 + $0x60] sm:$0xff] }
  0x2c   :  { %1693 = vmatpush3.bf16.msra.mxu0 %v1862_v50  ;;  %v20_v50 = vld [vmem:[%s2407_s0 + $0x28] sm:$0xff] }
  0x2d   :  { %1715 = vmatpush3.bf16.msra.mxu1 %v1863_v51  ;;  %1694 = vmatprep.subr.bf16.mxu0 %v1864_v52  ;;  %v28_v51 = vld [vmem:[%s2407_s0 + $0x68] sm:$0xff]  ;;  %v1499_v52 = vcombine.low %v19_v48, %v27_v49 }
  0x2e   :  { %1716 = vmatprep.subr.bf16.mxu1 %v1865_v53  ;;  %v1500_v53 = vcombine.high %v19_v48, %v27_v49 }
  0x30   :  { %1695 = vmatpush3.bf16.msra.mxu0 %v1866_v54  ;;  %v1501_v54 = vcombine.low %v20_v50, %v28_v51 }
  0x31   :  { %1717 = vmatpush3.bf16.msra.mxu1 %v1867_v55  ;;  %1696 = vmatprep.subr.bf16.mxu0 %v1868_v56  ;;  %v1502_v55 = vcombine.high %v20_v50, %v28_v51  ;;  %v1916_v56 = vld [vmem:[%s2406_s1 + $0x340] sm:$0xff]  }
  0x32   :  { %1718 = vmatprep.subr.bf16.mxu1 %v1869_v57  ;;  %v1917_v57 = vld [vmem:[%s2406_s1 + $0x3c0] sm:$0xff]  }
  0x34   :  { %1697 = vmatpush3.bf16.msra.mxu0 %v1870_v58  ;;  %v1918_v58 = vld [vmem:[%s2406_s1 + $0x300] sm:$0xff]  }
  0x35   :  { %1719 = vmatpush3.bf16.msra.mxu1 %v1871_v59  ;;  %1698 = vmatprep.subr.bf16.mxu0 %v1872_v60  ;;  %v1919_v59 = vld [vmem:[%s2406_s1 + $0x380] sm:$0xff]   ;;  %v1920_v60 = vld [vmem:[%s2406_s1 + $0x348] sm:$0xff]  }
  0x36   :  { %1720 = vmatprep.subr.bf16.mxu1 %v1873_v61  ;;  %v1921_v61 = vld [vmem:[%s2406_s1 + $0x3c8] sm:$0xff]  }
  0x38   :  { %1699 = vmatpush3.bf16.msra.mxu0 %v1874_v62  ;;  %v1922_v62 = vld [vmem:[%s2406_s1 + $0x308] sm:$0xff]  }
  0x39   :  { %1721 = vmatpush3.bf16.msra.mxu1 %v1875_v63  ;;  %1700 = vmatprep.subr.bf16.mxu0 %v1876_v0  ;;  %v1923_v63 = vld [vmem:[%s2406_s1 + $0x388] sm:$0xff]   ;;  %v1924_v0 = vld [vmem:[%s2406_s1 + $0x350] sm:$0xff]  }
  0x3a   :  { %1722 = vmatprep.subr.bf16.mxu1 %v1877_v1  ;;  %v1925_v1 = vld [vmem:[%s2406_s1 + $0x3d0] sm:$0xff]  }
  0x3c   :  { %1701 = vmatpush3.bf16.msra.mxu0 %v1878_v2  ;;  %v1926_v2 = vld [vmem:[%s2406_s1 + $0x310] sm:$0xff]  }
  0x3d   :  { %1723 = vmatpush3.bf16.msra.mxu1 %v1879_v3  ;;  %1702 = vmatprep.subr.bf16.mxu0 %v1880_v4  ;;  %v1927_v3 = vld [vmem:[%s2406_s1 + $0x390] sm:$0xff]   ;;  %v1928_v4 = vld [vmem:[%s2406_s1 + $0x358] sm:$0xff]  }
  0x3e   :  { %1724 = vmatprep.subr.bf16.mxu1 %v1881_v5  ;;  %v1929_v5 = vld [vmem:[%s2406_s1 + $0x3d8] sm:$0xff]  }
  0x40   :  { %1703 = vmatpush3.bf16.msra.mxu0 %v1882_v6  ;;  %v1930_v6 = vld [vmem:[%s2406_s1 + $0x318] sm:$0xff]  }
  0x41   :  { %1725 = vmatpush3.bf16.msra.mxu1 %v1883_v7  ;;  %1732 = vmatprep.subr.bf16.mxu0 %v1884_v16  ;;  %v1931_v7 = vld [vmem:[%s2406_s1 + $0x398] sm:$0xff]   ;;  %v1940_v16 = vld [vmem:[%s2406_s1 + $0x370] sm:$0xff]  }
  0x42   :  { %1754 = vmatprep.subr.bf16.mxu1 %v1885_v17  ;;  %v1941_v17 = vld [vmem:[%s2406_s1 + $0x3f0] sm:$0xff]  }
  0x43   :  { %1257 = vmatmul.mubr.bf16.vlgmr.msra.gmra.mrb[4].mxu0 %v1495_v10  ;;  %v1934_v10 = vld [vmem:[%s2406_s1 + $0x320] sm:$0xff]  }
  0x44   :  { %1298 = vmatmul.mubr.bf16.vlgmr.msra.gmra.mrb[4].mxu1 %v1497_v14  ;;  %1733 = vmatpush3.bf16.msra.mxu0 %v1886_v18  ;;  %v1938_v14 = vld [vmem:[%s2406_s1 + $0x328] sm:$0xff]   ;;  %v1942_v18 = vld [vmem:[%s2406_s1 + $0x330] sm:$0xff]  }
  0x45   :  { %1755 = vmatpush3.bf16.msra.mxu1 %v1887_v19  ;;  %1734 = vmatprep.subr.bf16.mxu0 %v1888_v20  ;;  %v1943_v19 = vld [vmem:[%s2406_s1 + $0x3b0] sm:$0xff]   ;;  %v1944_v20 = vld [vmem:[%s2406_s1 + $0x378] sm:$0xff]  }
  0x46   :  { %1756 = vmatprep.subr.bf16.mxu1 %v1889_v21  ;;  %1338 = vmatprep.mubr.bf16.mxu0 %v1500_v53  ;;  %v1945_v21 = vld [vmem:[%s2406_s1 + $0x3f8] sm:$0xff]  }
  0x47   :  { %1379 = vmatprep.mubr.bf16.mxu1 %v1502_v55 }
  0x48   :  { %1735 = vmatpush3.bf16.msra.mxu0 %v1890_v22  ;;  %v1946_v22 = vld [vmem:[%s2406_s1 + $0x338] sm:$0xff]  }
  0x49   :  { %1757 = vmatpush3.bf16.msra.mxu1 %v1891_v23  ;;  %1736 = vmatprep.subr.bf16.mxu0 %v1892_v24  ;;  %v1947_v23 = vld [vmem:[%s2406_s1 + $0x3b8] sm:$0xff]   ;;  %v21_v24 = vld [vmem:[%s2407_s0 + $0x30] sm:$0xff] }
  0x4a   :  { %1758 = vmatprep.subr.bf16.mxu1 %v1893_v25  ;;  %v29_v25 = vld [vmem:[%s2407_s0 + $0x70] sm:$0xff] }
  0x4c   :  { %1737 = vmatpush3.bf16.msra.mxu0 %v1894_v26  ;;  %v22_v26 = vld [vmem:[%s2407_s0 + $0x38] sm:$0xff] }
  0x4d   :  { %1759 = vmatpush3.bf16.msra.mxu1 %v1895_v27  ;;  %1738 = vmatprep.subr.bf16.mxu0 %v1896_v28  ;;  %v1503_v27 = vcombine.low %v21_v24, %v29_v25  ;;  %v1504_v28 = vcombine.high %v21_v24, %v29_v25 }
  0x4e   :  { %1760 = vmatprep.subr.bf16.mxu1 %v1897_v29  ;;  %v30_v29 = vld [vmem:[%s2407_s0 + $0x78] sm:$0xff] }
  0x50   :  { %1739 = vmatpush3.bf16.msra.mxu0 %v1898_v30  ;;  %v1505_v30 = vcombine.low %v22_v26, %v30_v29 }
  0x51   :  { %1761 = vmatpush3.bf16.msra.mxu1 %v1899_v31  ;;  %1740 = vmatprep.subr.bf16.mxu0 %v1900_v32  ;;  %v1506_v31 = vcombine.high %v22_v26, %v30_v29 }
  0x52   :  { %1762 = vmatprep.subr.bf16.mxu1 %v1901_v33 }
  0x54   :  { %1741 = vmatpush3.bf16.msra.mxu0 %v1902_v34  ;;  %v1490_v34 = vld [vmem:[%s2408_s2] ss:$0 sm:$0xff] }
  0x55   :  { %1763 = vmatpush3.bf16.msra.mxu1 %v1903_v35  ;;  %1742 = vmatprep.subr.bf16.mxu0 %v1904_v36 }
  0x56   :  { %1764 = vmatprep.subr.bf16.mxu1 %v1905_v37 }
  0x58   :  { %1743 = vmatpush3.bf16.msra.mxu0 %v1906_v38 }
  0x59   :  { %1765 = vmatpush3.bf16.msra.mxu1 %v1907_v39  ;;  %1744 = vmatprep.subr.bf16.mxu0 %v1908_v40 }
  0x5a   :  { %1766 = vmatprep.subr.bf16.mxu1 %v1909_v41 }
  0x5c   :  { %1745 = vmatpush3.bf16.msra.mxu0 %v1910_v42 }
  0x5d   :  { %1767 = vmatpush3.bf16.msra.mxu1 %v1911_v43  ;;  %1746 = vmatprep.subr.bf16.mxu0 %v1912_v44 }
  0x5e   :  { %1768 = vmatprep.subr.bf16.mxu1 %v1913_v45 }
  0x60   :  { %1747 = vmatpush3.bf16.msra.mxu0 %v1914_v46 }
  0x61   :  { %1769 = vmatpush3.bf16.msra.mxu1 %v1915_v47  ;;  %1776 = vmatprep.subr.bf16.mxu0 %v1916_v56 }
  0x62   :  { %1798 = vmatprep.subr.bf16.mxu1 %v1917_v57 }
  0x63   :  { %1339 = vmatmul.mubr.bf16.vlgmr.msra.gmra.mrb[8].mxu0 %v1499_v52 }
  0x64   :  { %1380 = vmatmul.mubr.bf16.vlgmr.msra.gmra.mrb[8].mxu1 %v1501_v54  ;;  %1777 = vmatpush3.bf16.msra.mxu0 %v1918_v58 }
  0x65   :  { %1799 = vmatpush3.bf16.msra.mxu1 %v1919_v59  ;;  %1778 = vmatprep.subr.bf16.mxu0 %v1920_v60 }
  0x66   :  { %1800 = vmatprep.subr.bf16.mxu1 %v1921_v61  ;;  %1420 = vmatprep.mubr.bf16.mxu0 %v1504_v28 }
  0x67   :  { %1461 = vmatprep.mubr.bf16.mxu1 %v1506_v31 }
  0x68   :  { %1779 = vmatpush3.bf16.msra.mxu0 %v1922_v62 }
  0x69   :  { %1801 = vmatpush3.bf16.msra.mxu1 %v1923_v63  ;;  %1780 = vmatprep.subr.bf16.mxu0 %v1924_v0 }
  0x6a   :  { %1802 = vmatprep.subr.bf16.mxu1 %v1925_v1 }
  0x6c   :  { %1781 = vmatpush3.bf16.msra.mxu0 %v1926_v2 }
  0x6d   :  { %1803 = vmatpush3.bf16.msra.mxu1 %v1927_v3  ;;  %1782 = vmatprep.subr.bf16.mxu0 %v1928_v4 }
  0x6e   :  { %1804 = vmatprep.subr.bf16.mxu1 %v1929_v5 }
  0x70   :  { %1783 = vmatpush3.bf16.msra.mxu0 %v1930_v6 }
  0x71   :  { %1805 = vmatpush3.bf16.msra.mxu1 %v1931_v7  ;;  %1784 = vmatprep.subr.bf16.mxu0 %v1932_v8 }
  0x72   :  { %1806 = vmatprep.subr.bf16.mxu1 %v1933_v9 }
  0x74   :  { %1785 = vmatpush3.bf16.msra.mxu0 %v1934_v10 }
  0x75   :  { %1807 = vmatpush3.bf16.msra.mxu1 %v1935_v11  ;;  %1786 = vmatprep.subr.bf16.mxu0 %v1936_v12 }
  0x76   :  { %1808 = vmatprep.subr.bf16.mxu1 %v1937_v13 }
  0x78   :  { %1787 = vmatpush3.bf16.msra.mxu0 %v1938_v14 }
  0x79   :  { %1809 = vmatpush3.bf16.msra.mxu1 %v1939_v15  ;;  %1788 = vmatprep.subr.bf16.mxu0 %v1940_v16 }
  0x7a   :  { %1810 = vmatprep.subr.bf16.mxu1 %v1941_v17 }
  0x7c   :  { %1789 = vmatpush3.bf16.msra.mxu0 %v1942_v18 }
  0x7d   :  { %1811 = vmatpush3.bf16.msra.mxu1 %v1943_v19  ;;  %1790 = vmatprep.subr.bf16.mxu0 %v1944_v20 }
  0x7e   :  { %1812 = vmatprep.subr.bf16.mxu1 %v1945_v21 }
  0x80   :  { %1791 = vmatpush3.bf16.msra.mxu0 %v1946_v22 }
  0x81   :  { %1813 = vmatpush3.bf16.msra.mxu1 %v1947_v23 }
  0x83   :  { %1421 = vmatmul.mubr.bf16.vlgmr.msra.gmra.mrb[12].mxu0 %v1503_v27 }
  0x84   :  { %1462 = vmatmul.mubr.bf16.vlgmr.msra.gmra.mrb[12].mxu1 %v1505_v30 }
  0xf6   :  { %v1660_v32 = vpop.f32.mrb[0].mxu0 }
  0xf7   :  { %v1682_v33 = vpop.f32.mrb[0].mxu1  ;;  %v1661_v35 = vpop.f32.mrb[1].mxu0 }
  0xf8   :  { %v1662_v36 = vadd.f32 %v1661_v35, %v1660_v32  ;;  %v1683_v37 = vpop.f32.mrb[1].mxu1  ;;  %v1663_v38 = vpop.f32.mrb[2].mxu0 }
  0xf9   :  { %v1684_v39 = vadd.f32 %v1683_v37, %v1682_v33  ;;  %v1685_v40 = vpop.f32.mrb[2].mxu1  ;;  %v1664_v41 = vpop.f32.mrb[3].mxu0 }
  0xfa   :  { %v1177_v42 = vadd.f32 %v1662_v36, %v1490_v34  ;;  %v1665_v43 = vadd.f32 %v1664_v41, %v1663_v38  ;;  %v1686_v44 = vpop.f32.mrb[3].mxu1 }
  0xfb   :  { %v1687_v45 = vadd.f32 %v1686_v44, %v1685_v40 }
  0xfc   :  { %v1218_v46 = vadd.f32 %v1684_v39, %v1177_v42  ;;  %v1180_v47 = vadd.f32 %v1665_v43, %v1490_v34 }
  0xfe   :  { %v1221_v48 = vadd.f32 %v1687_v45, %v1180_v47 }
 0x116   :  { %v1704_v49 = vpop.f32.mrb[4].mxu0 }
 0x117   :  { %v1726_v50 = vpop.f32.mrb[4].mxu1  ;;  %v1705_v51 = vpop.f32.mrb[5].mxu0 }
 0x118   :  { %v1706_v52 = vadd.f32 %v1705_v51, %v1704_v49  ;;  %v1727_v53 = vpop.f32.mrb[5].mxu1  ;;  %v1707_v54 = vpop.f32.mrb[6].mxu0 }
 0x119   :  { %v1728_v55 = vadd.f32 %v1727_v53, %v1726_v50  ;;  %v1729_v56 = vpop.f32.mrb[6].mxu1  ;;  %v1708_v57 = vpop.f32.mrb[7].mxu0 }
 0x11a   :  { %v1259_v58 = vadd.f32 %v1706_v52, %v1218_v46  ;;  %v1709_v59 = vadd.f32 %v1708_v57, %v1707_v54  ;;  %v1730_v60 = vpop.f32.mrb[7].mxu1 }
 0x11b   :  { %v1731_v61 = vadd.f32 %v1730_v60, %v1729_v56 }
 0x11c   :  { %v1300_v62 = vadd.f32 %v1728_v55, %v1259_v58  ;;  %v1262_v63 = vadd.f32 %v1709_v59, %v1221_v48 }
 0x11e   :  { %v1303_v0 = vadd.f32 %v1731_v61, %v1262_v63 }
 0x136   :  { %v1748_v1 = vpop.f32.mrb[8].mxu0 }
 0x137   :  { %v1770_v2 = vpop.f32.mrb[8].mxu1  ;;  %v1749_v3 = vpop.f32.mrb[9].mxu0 }
 0x138   :  { %v1771_v4 = vpop.f32.mrb[9].mxu1  ;;  %v1750_v5 = vadd.f32 %v1749_v3, %v1748_v1  ;;  %v1751_v7 = vpop.f32.mrb[10].mxu0 }
 0x139   :  { %v1772_v6 = vadd.f32 %v1771_v4, %v1770_v2  ;;  %v1773_v8 = vpop.f32.mrb[10].mxu1  ;;  %v1752_v9 = vpop.f32.mrb[11].mxu0 }
 0x13a   :  { %v1774_v10 = vpop.f32.mrb[11].mxu1  ;;  %v1341_v11 = vadd.f32 %v1750_v5, %v1300_v62  ;;  %v1753_v12 = vadd.f32 %v1752_v9, %v1751_v7 }
 0x13b   :  { %v1775_v13 = vadd.f32 %v1774_v10, %v1773_v8 }
 0x13c   :  { %v1382_v14 = vadd.f32 %v1772_v6, %v1341_v11  ;;  %v1344_v15 = vadd.f32 %v1753_v12, %v1303_v0 }
 0x13e   :  { %v1385_v16 = vadd.f32 %v1775_v13, %v1344_v15 }
 0x156   :  { %v1792_v17 = vpop.f32.mrb[12].mxu0 }
 0x157   :  { %v1814_v18 = vpop.f32.mrb[12].mxu1  ;;  %v1793_v19 = vpop.f32.mrb[13].mxu0 }
 0x158   :  { %v1794_v20 = vadd.f32 %v1793_v19, %v1792_v17  ;;  %v1815_v21 = vpop.f32.mrb[13].mxu1  ;;  %v1795_v22 = vpop.f32.mrb[14].mxu0 }
 0x159   :  { %v1816_v23 = vadd.f32 %v1815_v21, %v1814_v18  ;;  %v1817_v24 = vpop.f32.mrb[14].mxu1  ;;  %v1796_v25 = vpop.f32.mrb[15].mxu0 }
 0x15a   :  { %v1423_v26 = vadd.f32 %v1794_v20, %v1382_v14  ;;  %v1797_v27 = vadd.f32 %v1796_v25, %v1795_v22  ;;  %v1818_v28 = vpop.f32.mrb[15].mxu1 }
 0x15b   :  { %v1819_v29 = vadd.f32 %v1818_v28, %v1817_v24 }
 0x15c   :  { %v1464_v30 = vadd.f32 %v1816_v23, %v1423_v26  ;;  %v1426_v31 = vadd.f32 %v1797_v27, %v1385_v16 }
 0x15e   :  { %v1472_v32 = vmul.f32 0.2, %v1464_v30  ;;  %v1467_v33 = vadd.f32 %v1819_v29, %v1426_v31  ;;  %vm1470_vm0 = vcmp.ge.f32.partialorder %v1464_v30, 0.0 }
 0x160   :  { %vm1471_vm1 = vcmp.ge.f32.partialorder %v1467_v33, 0.0  ;;  %v1473_v34 = vmul.f32 0.2, %v1467_v33  ;;  %v1474_v35 = vsel %vm1470_vm0, %v1464_v30, %v1472_v32 }
 0x162   :  { %v1475_v36 = vsel %vm1471_vm1, %v1467_v33, %v1473_v34 }
 0x163   :  { %v1642_v37 = vpack.c.bf16 %v1475_v36, %v1474_v35 }
 0x165   :  { %1643 = vst [vmem:[%s2409_s3] sm:$0xff] %v1642_v37  }

</bundles_post_ra>
